<compile_context>
chip_gen: v7x
topology: tpu7x:2x2x1
jax: 0.10.0
libtpu: 0.0.40
codegen_flags: <defaults>
</compile_context>

<pallas_src>
import jax
import jax.numpy as jnp
from jax.experimental import pallas as pl
from jax.experimental.pallas import tpu as pltpu


# ----------------------------------------------------------------------------
# Pallas kernel: identity via a single HBM->HBM DMA (the entire live forward
# path of FilterToConv).
# ----------------------------------------------------------------------------
def _dma_identity_kernel(x_ref, o_ref, sem):
    cp = pltpu.make_async_copy(x_ref, o_ref, sem)
    cp.start()
    cp.wait()


def filter_to_conv_forward(x):
    """Forward pass of FilterToConv: exact identity (early `return x`).

    The cheapest correct implementation is literally `return x` (zero bytes
    moved); since a Pallas kernel is required, the copy is done as one
    HBM->HBM DMA: no grid, no VMEM staging, no tiling constraints, and it is
    valid for any shape/dtype on v5e / v6e / v7x alike.
    """
    return pl.pallas_call(
        _dma_identity_kernel,
        out_shape=jax.ShapeDtypeStruct(x.shape, x.dtype),
        in_specs=[pl.BlockSpec(memory_space=pl.ANY)],
        out_specs=pl.BlockSpec(memory_space=pl.ANY),
        scratch_shapes=[pltpu.SemaphoreType.DMA(())],
    )(x)


# ----------------------------------------------------------------------------
# Deterministic parameter construction (shapes from __init__).  These mirror
# module construction but — exactly like the PyTorch code after `return x` —
# are never used by the forward pass.
# ----------------------------------------------------------------------------
def init_params(radius, out_dim=216, seed=0):
    key = jax.random.PRNGKey(seed)
    ks = jax.random.split(key, 4)
    params = {
        "conv1_w": jax.random.normal(ks[0], (8, 1, 5, 5), jnp.float32) * 0.02,
        "conv1_b": jnp.zeros((8,), jnp.float32),
        "conv2_w": jax.random.normal(ks[1], (32, 8, 5, 5), jnp.float32) * 0.02,
        "conv2_b": jnp.zeros((32,), jnp.float32),
        "conv3_w": jax.random.normal(ks[2], (out_dim // 9, 32, 3, 3), jnp.float32) * 0.02,
        "conv3_b": jnp.zeros((out_dim // 9,), jnp.float32),
        "lin_w": jax.random.normal(ks[3], (out_dim, radius * radius), jnp.float32) * 0.02,
        "lin_b": jnp.zeros((out_dim,), jnp.float32),
    }
    # TODO(synk): the conv/linear path after `return x` in the PyTorch forward
    # is unreachable dead code; it is intentionally not executed here either.
    return params


if __name__ == "__main__":
    radius = 16
    B, C, H, W = 2, 4, radius, radius

    key = jax.random.PRNGKey(0)
    x = jax.random.normal(key, (B, C, H, W), dtype=jnp.float32)

    _ = init_params(radius)  # constructed deterministically, unused by forward

    out = filter_to_conv_forward(x)
    out = jax.block_until_ready(out)

    assert out.shape == x.shape and out.dtype == x.dtype
    assert bool(jnp.array_equal(out, x))
    print("KERNEL_OK")
</pallas_src>

<mosaic_0001>
module attributes {stable_mosaic.version = 11 : i64} {
  func.func @_dma_identity_kernel(%arg0: memref<2x4x16x16xf32, #tpu.memory_space<any>>, %arg1: memref<2x4x16x16xf32, #tpu.memory_space<any>>, %arg2: memref<!tpu.dma_semaphore, #tpu.memory_space<semaphore_mem>>) attributes {dimension_semantics = [], scalar_prefetch = 0 : i64, scratch_operands = 1 : i64, tpu.core_type = #tpu.core_type<tc>} {
    tpu.enqueue_dma source(%arg0 : memref<2x4x16x16xf32, #tpu.memory_space<any>>) target(%arg1 : memref<2x4x16x16xf32, #tpu.memory_space<any>>) target_semaphore(%arg2 : memref<!tpu.dma_semaphore, #tpu.memory_space<semaphore_mem>>)
    tpu.wait_dma2 semaphore(%arg2 : memref<!tpu.dma_semaphore, #tpu.memory_space<semaphore_mem>>) src(%arg0 : memref<2x4x16x16xf32, #tpu.memory_space<any>>) dst(%arg1 : memref<2x4x16x16xf32, #tpu.memory_space<any>>)
    return
  }
}

</mosaic_0001>

<bundles_post_ra>
// kernel: tpu_custom_call.1
= control target key start
LH: loop header
LB: loop body
LE: loop exit
PB: predicated region body
PF: predicated region fallthrough
CT: control target
= control target key end

     0   :  { %s36_s6 = smov [#allocation2]   ;;  %s37_s7 = smov [#allocation3]   ;;  %s55_s0 = inlined_call_operand.hbm [shape: f32[2,4,16,16], index: 0, kind: input, shape index: {}]   ;;  %s56_s1 = inlined_call_operand.hbm [shape: f32[2,4,16,16], index: 1, kind: output, shape index: {}]  }
   0x1   :  { %s38_s8 = smov 0  }
   0x2   :  { %18 = dma.general %s55_s0, 2048, %s56_s1, %s36_s6, %s37_s7, [#allocation4], %s38_s8, 0  }
   0x3   :  { %34 = dma.done.wait [#allocation2], 2048 }
   0x4   :  { %35 = vsyncadd [#allocation2], 4294965248 }
   0x5   :  { %24 = vsyncmov [#allocation2] }
   0x8   :  { %s25_s13 = vpop.sfrf %24 }
   0x9   :  { %p30_p0 = scmp.ne.s32.totalorder %s25_s13, 0 }
   0xb   :  { %29 = shalt.err (%p30_p0)  }

</bundles_post_ra>
